<compile_context>
chip_gen: v5e
topology: v5e:2x2
jax: 0.10.0
libtpu: 0.0.40
codegen_flags: <defaults>
</compile_context>

<pallas_src>
import jax
import jax.numpy as jnp
from jax.experimental import pallas as pl
from jax.experimental.pallas import tpu as pltpu

# ---------------------------------------------------------------------------
# Hyper-parameters (module-level globals referenced by the PyTorch file)
# ---------------------------------------------------------------------------
EMBEDDING_DIM = 16
HIDDEN_UNITS = (64, 32)
DROPOUT = 0.5          # inference: identity
NUM_CLASSES = 2

NUM_USERS = 24
NUM_ITEMS = 40
NUM_GENRES = 8
NUM_TAGS = 8

BATCH = 8

H1, H2 = HIDDEN_UNITS
DEEP_IN_DIM = 2 * EMBEDDING_DIM + NUM_GENRES + NUM_TAGS      # 48

# ---------------------------------------------------------------------------
# Packed, lane-dense parameter slab layout (single VMEM-resident f32 blob).
# Every weight block is zero-padded to the full 128-lane width so all in-kernel
# loads are unmasked and all matmuls run at padded N at zero extra cost.
# ---------------------------------------------------------------------------
SLAB_COLS = 128
R_W1 = 0                        # (DEEP_IN_DIM, H1) in cols 0:64, rows   0..47
R_B1 = 48                       # (1, H1)           in cols 0:64, row   48
R_W2 = 56                       # (H1, H2)          in cols 0:32, rows  56..119
R_B2 = 184                      # (1, H2)           in cols 0:32, row  184
R_WF = 192                      # (H2, C)           in cols 0:2,  rows 192..223
R_BF = 320                      # (1, C) folded bias (b_wide@wf_wide + bf), row 320
SLAB_ROWS = 328                 # multiple of 8

# Batch tiling knobs (f32/bf16 sublane alignment + HBM streaming sweet spot).
TILE_ALIGN = 16                 # bf16 sublane-pack friendly
MAX_TILE_ROWS = 1024            # measured ~86% of HBM roofline at 1024-row tiles
MIN_SPLIT_TILE = 256            # split into >=2 tiles once each half is >= this


def _round_up(x, m):
    return ((x + m - 1) // m) * m


def _choose_tile(batch):
    """Pick (tile_rows, padded_batch): big tiles, pad <= tile/2, >=2 tiles at large B."""
    b_al = _round_up(batch, TILE_ALIGN)
    if b_al <= MAX_TILE_ROWS:
        if b_al >= 2 * MIN_SPLIT_TILE:
            # Two tiles so the "parallel" batch axis shards across v7x's 2 TCs.
            tb = _round_up(pl.cdiv(b_al, 2), TILE_ALIGN)
        else:
            # Small batch: one tile sized to the batch (minimal padding).
            tb = b_al
    else:
        nt = max(2, pl.cdiv(b_al, MAX_TILE_ROWS))
        tb = _round_up(pl.cdiv(b_al, nt), TILE_ALIGN)
    b_pad = _round_up(b_al, tb)
    return tb, b_pad


# ---------------------------------------------------------------------------
# Pallas kernel: deep MLP + head over one batch tile.
#   deep_in_ref : (TB, 48)  bf16  activation stream
#   params_ref  : (328,128) f32   resident packed slab (constant index_map)
#   out_ref     : (TB, 128) f32   lane-dense logits (cols 0:2 meaningful)
# ---------------------------------------------------------------------------
def wide_and_deep_kernel(deep_in_ref, params_ref, out_ref):
    # Static, full-lane views into the packed parameter slab (zero-cost slices).
    w1 = params_ref[R_W1:R_W1 + DEEP_IN_DIM, :]        # (48, 128), cols 64: are 0
    b1 = params_ref[R_B1:R_B1 + 1, :]                  # (1, 128)
    w2 = params_ref[R_W2:R_W2 + SLAB_COLS, :]          # (128, 128), rows 64:/cols 32: are 0
    b2 = params_ref[R_B2:R_B2 + 1, :]                  # (1, 128)
    wf = params_ref[R_WF:R_WF + SLAB_COLS, :]          # (128, 128), rows 32:/cols 2: are 0
    bf = params_ref[R_BF:R_BF + 1, :]                  # (1, 128)

    # bf16 stream -> f32 math; accumulation stays f32 throughout.
    x = deep_in_ref[...].astype(jnp.float32)            # (TB, 48)

    # Deep MLP: Linear -> ReLU -> (Dropout=id) -> Linear -> ReLU -> (Dropout=id)
    h = jnp.dot(x, w1, preferred_element_type=jnp.float32) + b1
    h = jnp.maximum(h, 0.0)                              # (TB, 128)
    h = jnp.dot(h, w2, preferred_element_type=jnp.float32) + b2
    h = jnp.maximum(h, 0.0)                              # (TB, 128)

    # Head (deep half + folded bias); wide half is added in the wrapper.
    out_ref[...] = jnp.dot(h, wf, preferred_element_type=jnp.float32) + bf


# ---------------------------------------------------------------------------
# One-time parameter preparation: wide-path algebraic fold + slab packing.
# ---------------------------------------------------------------------------
def prepare_params(params):
    wf_deep = params["wf"][:H2, :]                       # (H2, C)
    wf_wide = params["wf"][H2:, :]                       # (H2, C)

    # Fold the (linear) wide path into the head:
    #   one_hot @ W_wide @ Wf_wide + (b_wide @ Wf_wide + bf)
    w_wide_folded = params["w_wide"] @ wf_wide           # (NUM_USERS+NUM_ITEMS, C)
    b_fold = params["b_wide"] @ wf_wide + params["bf"]   # (1, C)

    slab = jnp.zeros((SLAB_ROWS, SLAB_COLS), jnp.float32)
    slab = slab.at[R_W1:R_W1 + DEEP_IN_DIM, :H1].set(params["w1"])
    slab = slab.at[R_B1, :H1].set(params["b1"][0])
    slab = slab.at[R_W2:R_W2 + H1, :H2].set(params["w2"])
    slab = slab.at[R_B2, :H2].set(params["b2"][0])
    slab = slab.at[R_WF:R_WF + H2, :NUM_CLASSES].set(wf_deep)
    slab = slab.at[R_BF, :NUM_CLASSES].set(b_fold[0])

    return dict(
        slab=slab,
        w_wide_folded=w_wide_folded,
        user_emb=params["user_emb"],
        item_emb=params["item_emb"],
        num_users=params["user_emb"].shape[0],
    )


# ---------------------------------------------------------------------------
# Forward wrapper: gathers + concat in XLA, hot path in the Pallas kernel.
# ---------------------------------------------------------------------------
def wide_and_deep_forward(prep, user, item, genre, tag):
    # Deep features: embedding gathers + concat, streamed as bf16.
    user_emb = jnp.take(prep["user_emb"], user, axis=0)
    item_emb = jnp.take(prep["item_emb"], item, axis=0)
    deep_input = jnp.concatenate([user_emb, item_emb, genre, tag], axis=1)
    deep_input = deep_input.astype(jnp.bfloat16)

    # Folded wide path: one-hot matmul == row gather of the folded matrix.
    # Added to the kernel output below (keeps the kernel to a single input stream).
    wfold = prep["w_wide_folded"]
    wide_logits = (
        jnp.take(wfold, user, axis=0)
        + jnp.take(wfold, prep["num_users"] + item, axis=0)
    )

    B = user.shape[0]
    TB, B_pad = _choose_tile(B)
    pad = B_pad - B
    if pad:
        deep_input = jnp.pad(deep_input, ((0, pad), (0, 0)))

    num_tiles = B_pad // TB
    flops = 2 * B_pad * (DEEP_IN_DIM * SLAB_COLS + 2 * SLAB_COLS * SLAB_COLS)
    bytes_accessed = (
        B_pad * DEEP_IN_DIM * 2            # bf16 activation stream
        + B_pad * SLAB_COLS * 4            # f32 lane-dense output
        + SLAB_ROWS * SLAB_COLS * 4        # resident slab (fetched once)
    )

    out = pl.pallas_call(
        wide_and_deep_kernel,
        out_shape=jax.ShapeDtypeStruct((B_pad, SLAB_COLS), jnp.float32),
        grid_spec=pltpu.PrefetchScalarGridSpec(
            num_scalar_prefetch=0,
            grid=(num_tiles,),
            in_specs=[
                pl.BlockSpec((TB, DEEP_IN_DIM), lambda i: (i, 0)),
                pl.BlockSpec((SLAB_ROWS, SLAB_COLS), lambda i: (0, 0)),  # resident
            ],
            out_specs=pl.BlockSpec((TB, SLAB_COLS), lambda i: (i, 0)),
        ),
        compiler_params=pltpu.CompilerParams(
            dimension_semantics=("parallel",),
        ),
        cost_estimate=pl.CostEstimate(
            flops=flops, transcendentals=0, bytes_accessed=bytes_accessed
        ),
    )(deep_input, prep["slab"])

    return out[:B, :NUM_CLASSES] + wide_logits


# ---------------------------------------------------------------------------
# Deterministic parameter init (PyTorch-style uniform(-1/sqrt(fan_in), ...))
# ---------------------------------------------------------------------------
def init_params(key):
    def linear(key, fan_in, fan_out):
        kw, kb = jax.random.split(key)
        bound = 1.0 / jnp.sqrt(fan_in)
        w = jax.random.uniform(kw, (fan_in, fan_out), jnp.float32, -bound, bound)
        b = jax.random.uniform(kb, (1, fan_out), jnp.float32, -bound, bound)
        return w, b

    keys = jax.random.split(key, 6)
    dw = NUM_USERS + NUM_ITEMS

    w_wide, b_wide = linear(keys[0], dw, H2)
    w1, b1 = linear(keys[1], DEEP_IN_DIM, H1)
    w2, b2 = linear(keys[2], H1, H2)
    wf, bf = linear(keys[3], 2 * H2, NUM_CLASSES)   # concat order: [deep, wide]

    user_emb = jax.random.normal(keys[4], (NUM_USERS, EMBEDDING_DIM), jnp.float32)
    item_emb = jax.random.normal(keys[5], (NUM_ITEMS, EMBEDDING_DIM), jnp.float32)

    return dict(
        w_wide=w_wide, b_wide=b_wide,
        w1=w1, b1=b1, w2=w2, b2=b2,
        wf=wf, bf=bf,
        user_emb=user_emb, item_emb=item_emb,
    )


# ---------------------------------------------------------------------------
# Pure-JAX reference mirroring the PyTorch module exactly (unfolded wide path)
# ---------------------------------------------------------------------------
def reference_forward(params, user, item, genre, tag):
    num_users = params["user_emb"].shape[0]
    num_items = params["item_emb"].shape[0]
    wide_input = jnp.concatenate(
        [jax.nn.one_hot(user, num_users), jax.nn.one_hot(item, num_items)], axis=1
    )
    wide_out = wide_input @ params["w_wide"] + params["b_wide"]
    deep = jnp.concatenate(
        [
            jnp.take(params["user_emb"], user, axis=0),
            jnp.take(params["item_emb"], item, axis=0),
            genre,
            tag,
        ],
        axis=1,
    )
    deep = jax.nn.relu(deep @ params["w1"] + params["b1"])
    deep = jax.nn.relu(deep @ params["w2"] + params["b2"])
    combined = jnp.concatenate([deep, wide_out], axis=1)
    return combined @ params["wf"] + params["bf"]


if __name__ == "__main__":
    key = jax.random.PRNGKey(0)
    kp, ku, ki, kg, kt = jax.random.split(key, 5)

    params = init_params(kp)
    prep = prepare_params(params)

    user = jax.random.randint(ku, (BATCH,), 0, NUM_USERS, dtype=jnp.int32)
    item = jax.random.randint(ki, (BATCH,), 0, NUM_ITEMS, dtype=jnp.int32)
    genre = jax.random.uniform(kg, (BATCH, NUM_GENRES), jnp.float32)
    tag = jax.random.uniform(kt, (BATCH, NUM_TAGS), jnp.float32)

    logits = wide_and_deep_forward(prep, user, item, genre, tag)
    jax.block_until_ready(logits)

    ref = reference_forward(params, user, item, genre, tag)
    assert logits.shape == (BATCH, NUM_CLASSES)
    # bf16 activation streaming: tolerance loosened accordingly (intentional trade-off).
    assert jnp.allclose(logits, ref, rtol=2e-2, atol=2e-2), "mismatch vs reference"

    print("KERNEL_OK")
</pallas_src>

<mosaic_0001>
module attributes {stable_mosaic.version = 11 : i64} {
  func.func @wide_and_deep_kernel(%arg0: i32, %arg1: memref<16x48xbf16, #tpu.memory_space<vmem>>, %arg2: memref<328x128xf32, #tpu.memory_space<vmem>>, %arg3: memref<16x128xf32, #tpu.memory_space<vmem>>) attributes {dimension_semantics = [#tpu.dimension_semantics<parallel>], iteration_bounds = array<i64: 1>, scalar_prefetch = 0 : i64, scratch_operands = 0 : i64, tpu.core_type = #tpu.core_type<tc>, window_params = [{transform_indices = @transform_0, window_bounds = array<i64: 16, 48>}, {pipeline_mode = #tpu.pipeline_mode<synchronous>, transform_indices = @transform_1, window_bounds = array<i64: 328, 128>}, {transform_indices = @transform_2, window_bounds = array<i64: 16, 128>}]} {
    %c0 = arith.constant 0 : index
    %c0_0 = arith.constant 0 : index
    %0 = vector.load %arg2[%c0, %c0_0] : memref<328x128xf32, #tpu.memory_space<vmem>>, vector<48x128xf32>
    %c48 = arith.constant 48 : index
    %c0_1 = arith.constant 0 : index
    %1 = vector.load %arg2[%c48, %c0_1] : memref<328x128xf32, #tpu.memory_space<vmem>>, vector<1x128xf32>
    %c56 = arith.constant 56 : index
    %c0_2 = arith.constant 0 : index
    %2 = vector.load %arg2[%c56, %c0_2] : memref<328x128xf32, #tpu.memory_space<vmem>>, vector<128x128xf32>
    %c184 = arith.constant 184 : index
    %c0_3 = arith.constant 0 : index
    %3 = vector.load %arg2[%c184, %c0_3] : memref<328x128xf32, #tpu.memory_space<vmem>>, vector<1x128xf32>
    %c192 = arith.constant 192 : index
    %c0_4 = arith.constant 0 : index
    %4 = vector.load %arg2[%c192, %c0_4] : memref<328x128xf32, #tpu.memory_space<vmem>>, vector<128x128xf32>
    %c320 = arith.constant 320 : index
    %c0_5 = arith.constant 0 : index
    %5 = vector.load %arg2[%c320, %c0_5] : memref<328x128xf32, #tpu.memory_space<vmem>>, vector<1x128xf32>
    %c0_6 = arith.constant 0 : index
    %c0_7 = arith.constant 0 : index
    %6 = vector.load %arg1[%c0_6, %c0_7] : memref<16x48xbf16, #tpu.memory_space<vmem>>, vector<16x48xbf16>
    %7 = arith.extf %6 : vector<16x48xbf16> to vector<16x48xf32>
    %cst = arith.constant dense<0.000000e+00> : vector<16x128xf32>
    %8 = tpu.matmul %7, %0, %cst {dimension_numbers = #tpu.dot_dimension_numbers<[1], [0], [0], [1], [0, 0, 1, 1], [], []>} : vector<16x48xf32>, vector<48x128xf32>, vector<16x128xf32> -> vector<16x128xf32>
    %9 = vector.broadcast %1 : vector<1x128xf32> to vector<16x128xf32>
    %10 = arith.addf %8, %9 : vector<16x128xf32>
    %cst_8 = arith.constant 0.000000e+00 : f32
    %11 = vector.broadcast %cst_8 : f32 to vector<16x128xf32>
    %12 = arith.maximumf %10, %11 : vector<16x128xf32>
    %cst_9 = arith.constant dense<0.000000e+00> : vector<16x128xf32>
    %13 = tpu.matmul %12, %2, %cst_9 {dimension_numbers = #tpu.dot_dimension_numbers<[1], [0], [0], [1], [0, 0, 1, 1], [], []>} : vector<16x128xf32>, vector<128x128xf32>, vector<16x128xf32> -> vector<16x128xf32>
    %14 = vector.broadcast %3 : vector<1x128xf32> to vector<16x128xf32>
    %15 = arith.addf %13, %14 : vector<16x128xf32>
    %cst_10 = arith.constant 0.000000e+00 : f32
    %16 = vector.broadcast %cst_10 : f32 to vector<16x128xf32>
    %17 = arith.maximumf %15, %16 : vector<16x128xf32>
    %cst_11 = arith.constant dense<0.000000e+00> : vector<16x128xf32>
    %18 = tpu.matmul %17, %4, %cst_11 {dimension_numbers = #tpu.dot_dimension_numbers<[1], [0], [0], [1], [0, 0, 1, 1], [], []>} : vector<16x128xf32>, vector<128x128xf32>, vector<16x128xf32> -> vector<16x128xf32>
    %19 = vector.broadcast %5 : vector<1x128xf32> to vector<16x128xf32>
    %20 = arith.addf %18, %19 : vector<16x128xf32>
    %c0_12 = arith.constant 0 : index
    %c0_13 = arith.constant 0 : index
    %21 = vector.load %arg3[%c0_12, %c0_13] : memref<16x128xf32, #tpu.memory_space<vmem>>, vector<16x128xf32>
    tpu.vector_store %arg3[%c0_12, %c0_13], %20 {strides = array<i32>} : memref<16x128xf32, #tpu.memory_space<vmem>>, vector<16x128xf32>,
    return
  }
  func.func @transform_0(%arg0: i32) -> (i32, i32) {
    %c0_i32 = arith.constant 0 : i32
    %c0_i32_0 = arith.constant 0 : i32
    return %arg0, %c0_i32 : i32, i32
  }
  func.func @transform_1(%arg0: i32) -> (i32, i32) {
    %c0_i32 = arith.constant 0 : i32
    %c0_i32_0 = arith.constant 0 : i32
    %c0_i32_1 = arith.constant 0 : i32
    return %c0_i32, %c0_i32_0 : i32, i32
  }
  func.func @transform_2(%arg0: i32) -> (i32, i32) {
    %c0_i32 = arith.constant 0 : i32
    %c0_i32_0 = arith.constant 0 : i32
    return %arg0, %c0_i32 : i32, i32
  }
}

</mosaic_0001>

<bundles_post_ra>
// kernel: tpu_custom_call.1
= control target key start
LH: loop header
LB: loop body
LE: loop exit
PB: predicated region body
PF: predicated region fallthrough
CT: control target
= control target key end

     0   :  { %7 = vsyncpa [#allocation3], 0  ;;  %s343_s0 = inlined_call_operand.hbm [shape: bf16[16,48], index: 0, kind: input, shape index: {}]   ;;  %s344_s1 = inlined_call_operand.hbm [shape: f32[328,128], index: 1, kind: input, shape index: {}]   ;;  %s345_s2 = inlined_call_operand.hbm [shape: f32[16,128], index: 2, kind: output, shape index: {}]  }
   0x1   :  { %8 = vsyncpa [#allocation6], 0 }
   0x2   :  { %9 = vsyncpa [#allocation4], 0  ;;  %s14_s11 = sshll.u32 %s343_s0, 4  ;;  %s304_s12 = smov [#allocation2]   ;;  %s15_s11 = int_to_ptr.hbm [resolvable:$true] %s14_s11 }
   0x3   :  { %s16_s13 = sshll.u32 %s304_s12, 4  ;;  %s27_s16 = sshll.u32 %s344_s1, 4  ;;  %s17_s13 = int_to_ptr.vmem [resolvable:$true] %s16_s13  ;;  %s28_s16 = int_to_ptr.hbm [resolvable:$true] %s27_s16 }
   0x4   :  { %s305_s17 = smov 64   ;;  %s306_s18 = smov 4  }
   0x5   :  { %22 = dma.hbm_to_vmem [thread:$0]  %s15_s11, 128, %s17_s13, [#allocation3], %s305_s17, %s305_s17, %s306_s18  }
   0x6   :  { %s307_s19 = smov [#allocation5]   ;;  %s308_s21 = smov 128  }
   0x7   :  { %s29_s20 = sshll.u32 %s307_s19, 4  ;;  %s309_s22 = smov 8   ;;  %s30_s20 = int_to_ptr.vmem [resolvable:$true] %s29_s20 }
   0x8   :  { %35 = dma.hbm_to_vmem [thread:$0]  %s28_s16, 5248, %s30_s20, [#allocation6], %s308_s21, %s308_s21, %s309_s22  }
   0x9   :  { %298 = dma.done.wait [#allocation3], 128  }
   0xa   :  { %299 = vsyncadd [#allocation3], 4294967168 }
   0xb   :  { %300 = dma.done.wait [#allocation6], 5248  }
   0xc   :  { %301 = vsyncadd [#allocation6], 4294962048  ;;  %v49_v0 = vld [vmem:[#allocation5 + $0x28] sm:$0xff]  ;;  %v48_v1 = vld [vmem:[#allocation5 + $0x20] sm:$0xff]  ;;  %vm90_vm0 = vcmask 392192   ;;  %s310_s0 = smov [#allocation7]  }
   0xd   :  { %107 = vmatpush.msra.mxu0 %v49_v0  ;;  %v47_v2 = vld [vmem:[#allocation5 + $0x18] sm:$0xff]  ;;  %v66_v3 = vld [vmem:[#allocation5 + $0xb0] sm:$0xff]  ;;  %v65_v4 = vld [vmem:[#allocation5 + $0xa8] sm:$0xff]  ;;  %s178_s1 = sshll.u32 %s310_s0, 4  ;;  %s180_s25 = sshll.u32 %s345_s2, 4  ;;  %s179_s1 = int_to_ptr.vmem [resolvable:$true] %s178_s1  ;;  %s181_s25 = int_to_ptr.hbm [resolvable:$true] %s180_s25 }
   0xe   :  { %123 = vmatpush.msra.mxu1 %v66_v3  ;;  %v46_v5 = vld [vmem:[#allocation5 + $0x10] sm:$0xff]  ;;  %v64_v6 = vld [vmem:[#allocation5 + $0xa0] sm:$0xff]  ;;  %200 = vmatpush.msra.mxu3 %v66_v3  ;;  %v197_v7 = vld [vmem:[#allocation2] sm:$0xff]  }
   0xf   :  { %108 = vmatpush.msra.mxu0 %v48_v1  ;;  %v45_v8 = vld [vmem:[#allocation5 + $0x8] sm:$0xff]  ;;  %v63_v9 = vld [vmem:[#allocation5 + $0x98] sm:$0xff]  ;;  %v44_v10 = vld [vmem:[#allocation5] sm:$0xff]  ;;  %v198_v11 = vunpack.c.l.bf16 %v197_v7  ;;  %v199_v16 = vunpack.c.h.bf16 %v197_v7 }
  0x10   :  { %124 = vmatpush.msra.mxu1 %v65_v4  ;;  %201 = vmatpush.msra.mxu3 %v65_v4  ;;  %v62_v12 = vld [vmem:[#allocation5 + $0x90] sm:$0xff]  ;;  %v61_v13 = vld [vmem:[#allocation5 + $0x88] sm:$0xff]  ;;  %v60_v14 = vld [vmem:[#allocation5 + $0x80] sm:$0xff] }
  0x11   :  { %109 = vmatpush.msra.mxu0 %v47_v2  ;;  %v59_v15 = vld [vmem:[#allocation5 + $0x78] sm:$0xff]  ;;  %v58_v17 = vld [vmem:[#allocation5 + $0x70] sm:$0xff]  ;;  %v57_v18 = vld [vmem:[#allocation5 + $0x68] sm:$0xff] }
  0x12   :  { %125 = vmatpush.msra.mxu1 %v64_v6  ;;  %202 = vmatpush.msra.mxu3 %v64_v6  ;;  %v56_v19 = vld [vmem:[#allocation5 + $0x60] sm:$0xff]  ;;  %v55_v20 = vld [vmem:[#allocation5 + $0x58] sm:$0xff]  ;;  %v54_v21 = vld [vmem:[#allocation5 + $0x50] sm:$0xff] }
  0x13   :  { %110 = vmatpush.msra.mxu0 %v46_v5  ;;  %v53_v22 = vld [vmem:[#allocation5 + $0x48] sm:$0xff]  ;;  %v52_v23 = vld [vmem:[#allocation5 + $0x40] sm:$0xff]  ;;  %v51_v24 = vld [vmem:[#allocation5 + $0x38] sm:$0xff] }
  0x14   :  { %126 = vmatpush.msra.mxu1 %v63_v9  ;;  %203 = vmatpush.msra.mxu3 %v63_v9  ;;  %v83_v25 = vld [vmem:[#allocation5 + $0x138] sm:$0xff]  ;;  %v82_v26 = vld [vmem:[#allocation5 + $0x130] sm:$0xff]  ;;  %v81_v27 = vld [vmem:[#allocation5 + $0x128] sm:$0xff] }
  0x15   :  { %111 = vmatpush.msra.mxu0 %v45_v8  ;;  %149 = vmatpush.msra.mxu2 %v83_v25  ;;  %v80_v28 = vld [vmem:[#allocation5 + $0x120] sm:$0xff]  ;;  %v79_v29 = vld [vmem:[#allocation5 + $0x118] sm:$0xff]  ;;  %v78_v30 = vld [vmem:[#allocation5 + $0x110] sm:$0xff] }
  0x16   :  { %127 = vmatpush.msra.mxu1 %v62_v12  ;;  %204 = vmatpush.msra.mxu3 %v62_v12  ;;  %v77_v31 = vld [vmem:[#allocation5 + $0x108] sm:$0xff]  ;;  %v76_v32 = vld [vmem:[#allocation5 + $0x100] sm:$0xff]  ;;  %v75_v33 = vld [vmem:[#allocation5 + $0xf8] sm:$0xff] }
  0x17   :  { %112 = vmatpush.msra.mxu0 %v44_v10  ;;  %150 = vmatpush.msra.mxu2 %v82_v26  ;;  %v223_v34 = vld [vmem:[#allocation5 + $0x30] ss:$0 sm:$0xff]  ;;  %v73_v36 = vld [vmem:[#allocation5 + $0xe8] sm:$0xff]  ;;  %v72_v39 = vld [vmem:[#allocation5 + $0xe0] sm:$0xff] }
  0x18   :  { %194 = vmatmul.msk.f32.vlgmr.msra.gmra.mxu0 %vm90_vm0, %v198_v11  ;;  %128 = vmatpush.msra.mxu1 %v61_v13  ;;  %v74_v35 = vld [vmem:[#allocation5 + $0xf0] sm:$0xff]  ;;  %v71_v41 = vld [vmem:[#allocation5 + $0xd8] sm:$0xff]  ;;  %v69_v46 = vld [vmem:[#allocation5 + $0xc8] sm:$0xff] }
  0x19   :  { %205 = vmatpush.msra.mxu3 %v61_v13  ;;  %151 = vmatpush.msra.mxu2 %v81_v27  ;;  %v70_v45 = vld [vmem:[#allocation5 + $0xd0] sm:$0xff]  ;;  %v68_v47 = vld [vmem:[#allocation5 + $0xc0] sm:$0xff]  ;;  %v224_v48 = vld [vmem:[#allocation5 + $0xb8] ss:$0 sm:$0xff] }
  0x1a   :  { %129 = vmatpush.msra.mxu1 %v60_v14  ;;  %v225_v55 = vld [vmem:[#allocation5 + $0x140] ss:$0 sm:$0xff] }
  0x1b   :  { %206 = vmatpush.msra.mxu3 %v60_v14  ;;  %152 = vmatpush.msra.mxu2 %v80_v28 }
  0x1c   :  { %130 = vmatpush.msra.mxu1 %v59_v15 }
  0x1d   :  { %207 = vmatpush.msra.mxu3 %v59_v15  ;;  %153 = vmatpush.msra.mxu2 %v79_v29 }
  0x1e   :  { %131 = vmatpush.msra.mxu1 %v58_v17 }
  0x1f   :  { %208 = vmatpush.msra.mxu3 %v58_v17  ;;  %154 = vmatpush.msra.mxu2 %v78_v30 }
  0x20   :  { %195 = vmatmul.msk.f32.gmra.mxu0 %vm90_vm0, %v199_v16  ;;  %132 = vmatpush.msra.mxu1 %v57_v18 }
  0x21   :  { %209 = vmatpush.msra.mxu3 %v57_v18  ;;  %155 = vmatpush.msra.mxu2 %v77_v31 }
  0x22   :  { %133 = vmatpush.msra.mxu1 %v56_v19 }
  0x23   :  { %210 = vmatpush.msra.mxu3 %v56_v19  ;;  %156 = vmatpush.msra.mxu2 %v76_v32 }
  0x24   :  { %134 = vmatpush.msra.mxu1 %v55_v20 }
  0x25   :  { %211 = vmatpush.msra.mxu3 %v55_v20  ;;  %157 = vmatpush.msra.mxu2 %v75_v33 }
  0x26   :  { %135 = vmatpush.msra.mxu1 %v54_v21 }
  0x27   :  { %212 = vmatpush.msra.mxu3 %v54_v21  ;;  %158 = vmatpush.msra.mxu2 %v74_v35 }
  0x28   :  { %136 = vmatpush.msra.mxu1 %v53_v22 }
  0x29   :  { %213 = vmatpush.msra.mxu3 %v53_v22  ;;  %159 = vmatpush.msra.mxu2 %v73_v36 }
  0x2a   :  { %137 = vmatpush.msra.mxu1 %v52_v23 }
  0x2b   :  { %214 = vmatpush.msra.mxu3 %v52_v23  ;;  %160 = vmatpush.msra.mxu2 %v72_v39 }
  0x2c   :  { %138 = vmatpush.msra.mxu1 %v51_v24 }
  0x2d   :  { %215 = vmatpush.msra.mxu3 %v51_v24  ;;  %161 = vmatpush.msra.mxu2 %v71_v41 }
  0x2f   :  { %162 = vmatpush.msra.mxu2 %v70_v45 }
  0x31   :  { %163 = vmatpush.msra.mxu2 %v69_v46 }
  0x33   :  { %164 = vmatpush.msra.mxu2 %v68_v47 }
  0x95   :  { %v114_v37 = vpop.f32.mrf.mxu0 }
  0x96   :  { %v115_v38 = vadd.f32 %v223_v34, %v114_v37 }
  0x98   :  { %v120_v40 = vmax.f32 %v115_v38, 0.0 }
  0x9a   :  { %139 = vmatmul.f32.vlgmr.msra.gmra.mxu1 %v120_v40 }
  0x9d   :  { %v117_v42 = vpop.f32.mrf.mxu0 }
  0x9e   :  { %v118_v43 = vadd.f32 %v223_v34, %v117_v42 }
  0xa0   :  { %v121_v44 = vmax.f32 %v118_v43, 0.0 }
  0xa2   :  { %142 = vmatmul.f32.vlgmr.msra.gmra.mxu3 %v121_v44 }
 0x117   :  { %v140_v49 = vpop.f32.mrf.mxu1 }
 0x118   :  { %v141_v50 = vadd.f32 %v224_v48, %v140_v49 }
 0x11a   :  { %v146_v51 = vmax.f32 %v141_v50, 0.0 }
 0x11c   :  { %165 = vmatmul.f32.vlgmr.msra.gmra.mxu2 %v146_v51 }
 0x125   :  { %v143_v52 = vpop.f32.mrf.mxu3 }
 0x126   :  { %v144_v53 = vadd.f32 %v224_v48, %v143_v52 }
 0x128   :  { %v147_v54 = vmax.f32 %v144_v53, 0.0 }
 0x12a   :  { %168 = vmatmul.f32.gmra.mxu2 %v147_v54 }
 0x19f   :  { %v166_v56 = vpop.f32.mrf.mxu2 }
 0x1a0   :  { %v167_v57 = vadd.f32 %v225_v55, %v166_v56 }
 0x1a2   :  { %172 = vst [vmem:[#allocation7] sm:$0xff] %v167_v57 }
 0x1ad   :  { %v169_v58 = vpop.f32.mrf.mxu2 }
 0x1ae   :  { %v170_v59 = vadd.f32 %v225_v55, %v169_v58 }
 0x1b0   :  { %173 = vst [vmem:[#allocation7 + $0x8] sm:$0xff] %v170_v59 }
 0x1b1   :  { %186 = dma.vmem_to_hbm [thread:$0]  %s179_s1, 256, %s181_s25, [#allocation4], %s308_s21, %s308_s21, %s309_s22  }
 0x1b2   :  { %302 = dma.done.wait [#allocation4], 256  }
 0x1b3   :  { %303 = vsyncadd [#allocation4], 4294967040 }
 0x1b4   :  { %191 = vsyncpa [#allocation3], 1 }
 0x1b5   :  { %192 = vsyncpa [#allocation6], 1 }
 0x1b6   :  { %193 = vsyncpa [#allocation4], 1 }

</bundles_post_ra>
